<compile_context>
chip_gen: v7x
topology: tpu7x:2x2x1
jax: 0.10.0
libtpu: 0.0.40
codegen_flags: <defaults>
</compile_context>

<pallas_src>
import functools
import math

import jax
import jax.numpy as jnp
from jax.experimental import pallas as pl
from jax.experimental.pallas import tpu as pltpu


_SQRT_2_OVER_PI = math.sqrt(2.0 / math.pi)


def _gelu_tanh(x):
    # tanh-approximate GELU; identical formula used in kernel and reference.
    return 0.5 * x * (1.0 + jnp.tanh(_SQRT_2_OVER_PI * (x + 0.044715 * x * x * x)))


# ----------------------------------------------------------------------------
# Kernel 1: fc1  (x @ W1 + b1, optional ReLU), row-tiled over B*N.
# ----------------------------------------------------------------------------
def _linear_kernel(x_ref, w_ref, b_ref, o_ref, *, activation):
    x = x_ref[...].astype(jnp.float32)
    w = w_ref[...].astype(jnp.float32)
    acc = jnp.dot(x, w, preferred_element_type=jnp.float32)
    acc = acc + b_ref[...].astype(jnp.float32)
    if activation == "relu":
        acc = jnp.maximum(acc, 0.0)
    o_ref[...] = acc.astype(o_ref.dtype)


def _round_up(x, k):
    return (x + k - 1) // k * k


def _choose_row_tile(m, row_bytes, target_bytes=4 * 1024 * 1024):
    """Adaptive row tile: large enough (multi-MiB) to amortize the ~0.35us
    per-grid-step overhead, small enough that double-buffered blocks stay far
    below the scoped-VMEM limit on v5e/v6e/v7x, and leaving >=2 grid steps so
    v7x's two TensorCores both get work."""
    if m <= 8:
        return m
    tm = max(8, (target_bytes // max(row_bytes, 1)) // 8 * 8)
    tm = min(tm, _round_up(pl.cdiv(m, 2), 8))   # keep >= 2 grid steps
    tm = min(tm, (m // 8) * 8)                  # multiple of 8, <= m
    return max(tm, 8)


def _linear(x2, w, b, activation=None):
    """y = x2 @ w + b on a (M, K) slab; K and N are kept as full blocks
    (weights are DMA'd once - constant index_map), rows are tiled."""
    m, k = x2.shape
    n = w.shape[1]
    tm = _choose_row_tile(m, (k + n) * 4)
    grid = (pl.cdiv(m, tm),)   # ragged tail handled by masked partial blocks
    return pl.pallas_call(
        functools.partial(_linear_kernel, activation=activation),
        out_shape=jax.ShapeDtypeStruct((m, n), x2.dtype),
        grid_spec=pltpu.PrefetchScalarGridSpec(
            num_scalar_prefetch=0,
            grid=grid,
            in_specs=[
                pl.BlockSpec((tm, k), lambda i: (i, 0)),
                pl.BlockSpec((k, n), lambda i: (0, 0)),
                pl.BlockSpec((1, n), lambda i: (0, 0)),
            ],
            out_specs=pl.BlockSpec((tm, n), lambda i: (i, 0)),
        ),
        compiler_params=pltpu.CompilerParams(
            dimension_semantics=("parallel",)),
    )(x2, w, b.reshape(1, n))


# ----------------------------------------------------------------------------
# Kernel 2 (fused): 3x3 depthwise conv + GELU + fc2, one batch per grid step.
# Input is the spatially zero-padded hidden map in channels-last layout, so the
# conv is 9 shifted multiply-accumulates with per-channel weights; the result
# never leaves VMEM before the fc2 matmul.
# ----------------------------------------------------------------------------
def _dwconv_gelu_fc2_kernel(hp_ref, cw_ref, cb_ref, w2_ref, b2_ref, o_ref, *, H, W):
    ch = hp_ref.shape[-1]
    hp = hp_ref[0].astype(jnp.float32)          # (H+2, W+2, Ch)
    cw = cw_ref[...].astype(jnp.float32)        # (9, Ch)  taps in row-major (dy, dx)

    acc = jnp.zeros((H, W, ch), jnp.float32)
    for dy in range(3):
        for dx in range(3):
            k = dy * 3 + dx
            tap = hp[dy:dy + H, dx:dx + W, :]           # shifted window
            acc = acc + tap * cw[k:k + 1, :]            # per-channel weight
    acc = acc + cb_ref[...].astype(jnp.float32)         # depthwise-conv bias

    g = _gelu_tanh(acc)                                 # fused activation

    # fc2 on the VMEM-resident tile (saves an HBM round trip of the hidden act)
    g2 = g.reshape(H * W, ch)
    y = jnp.dot(g2, w2_ref[...].astype(jnp.float32),
                preferred_element_type=jnp.float32)
    y = y + b2_ref[...].astype(jnp.float32)
    o_ref[...] = y.reshape(1, H * W, -1).astype(o_ref.dtype)


# ----------------------------------------------------------------------------
# Wrapper matching Mlp.forward(x, H, W).  Weights are stored already
# transposed to (in, out) so no in-kernel transposes are needed
# (nn.Linear keeps (out, in) and does x @ W^T).
# ----------------------------------------------------------------------------
def mlp_forward(x, params, H, W, linear=False):
    B, N, C_in = x.shape
    assert N == H * W
    ch = params["w1"].shape[1]
    c_out = params["w2"].shape[1]

    # fc1 (+ optional ReLU when linear=True)
    h2 = _linear(x.reshape(B * N, C_in), params["w1"], params["b1"],
                 activation="relu" if linear else None)

    # 1-pixel spatial zero-pad = halo for the 3x3 depthwise conv (cheap XLA op,
    # no transpose: the (B, N, Ch) -> (B, H, W, Ch) reshape is free).
    hp = jnp.pad(h2.reshape(B, H, W, ch), ((0, 0), (1, 1), (1, 1), (0, 0)))

    y = pl.pallas_call(
        functools.partial(_dwconv_gelu_fc2_kernel, H=H, W=W),
        out_shape=jax.ShapeDtypeStruct((B, N, c_out), x.dtype),
        grid_spec=pltpu.PrefetchScalarGridSpec(
            num_scalar_prefetch=0,
            grid=(B,),
            in_specs=[
                pl.BlockSpec((1, H + 2, W + 2, ch), lambda b: (b, 0, 0, 0)),
                pl.BlockSpec((9, ch), lambda b: (0, 0)),
                pl.BlockSpec((1, ch), lambda b: (0, 0)),
                pl.BlockSpec((ch, c_out), lambda b: (0, 0)),
                pl.BlockSpec((1, c_out), lambda b: (0, 0)),
            ],
            out_specs=pl.BlockSpec((1, N, c_out), lambda b: (b, 0, 0)),
        ),
        compiler_params=pltpu.CompilerParams(
            dimension_semantics=("parallel",)),
    )(hp, params["cw"].reshape(9, ch), params["cb"].reshape(1, ch),
      params["w2"], params["b2"].reshape(1, c_out))
    # dropout (p=0.0 / eval) is the identity
    return y


# ----------------------------------------------------------------------------
# Pure-JAX reference mirroring the PyTorch forward (channels-last dwconv).
# ----------------------------------------------------------------------------
def _ref_mlp(x, params, H, W, linear=False):
    B, N, _ = x.shape
    h = x @ params["w1"] + params["b1"]
    if linear:
        h = jnp.maximum(h, 0.0)
    ch = h.shape[-1]
    hc = h.reshape(B, H, W, ch)
    hp = jnp.pad(hc, ((0, 0), (1, 1), (1, 1), (0, 0)))
    acc = jnp.zeros_like(hc)
    for dy in range(3):
        for dx in range(3):
            acc = acc + hp[:, dy:dy + H, dx:dx + W, :] * params["cw"][dy, dx]
    acc = acc + params["cb"]
    g = _gelu_tanh(acc)
    y = g.reshape(B, N, ch) @ params["w2"] + params["b2"]
    return y


if __name__ == "__main__":
    key = jax.random.PRNGKey(0)
    ks = jax.random.split(key, 7)
    B, H, W = 2, 8, 8
    N = H * W
    C_in, C_hid, C_out = 32, 64, 32   # out_features defaults to in_features

    def q(a):
        # snap params/inputs to bf16-representable f32 so any bf16 MXU pass
        # (XLA default precision) matches the f32 kernel path tightly.
        return a.astype(jnp.bfloat16).astype(jnp.float32)

    # Deterministic, non-trivial parameters (module init would be
    # trunc-normal weights / zero biases; forward semantics are param-agnostic,
    # nonzero biases exercise every term).
    x = q(jax.random.normal(ks[0], (B, N, C_in), jnp.float32))
    params = {
        "w1": q(0.2 * jax.random.normal(ks[1], (C_in, C_hid), jnp.float32)),
        "b1": q(0.1 * jax.random.normal(ks[2], (C_hid,), jnp.float32)),
        "cw": q(0.5 * jax.random.normal(ks[3], (3, 3, C_hid), jnp.float32)),
        "cb": q(0.1 * jax.random.normal(ks[4], (C_hid,), jnp.float32)),
        "w2": q(0.2 * jax.random.normal(ks[5], (C_hid, C_out), jnp.float32)),
        "b2": q(0.1 * jax.random.normal(ks[6], (C_out,), jnp.float32)),
    }

    for lin in (False, True):   # default Mlp(linear=False) plus the ReLU path
        y = jax.block_until_ready(mlp_forward(x, params, H, W, linear=lin))
        ref = _ref_mlp(x, params, H, W, linear=lin)
        assert y.shape == (B, N, C_out)
        assert jnp.allclose(y, ref, atol=2e-2, rtol=2e-2), (
            "max abs err", float(jnp.max(jnp.abs(y - ref))))

    print("KERNEL_OK")
</pallas_src>

<mosaic_0001>
module attributes {stable_mosaic.version = 11 : i64} {
  func.func @_linear_kernel(%arg0: i32, %arg1: memref<64x32xf32, #tpu.memory_space<vmem>>, %arg2: memref<32x64xf32, #tpu.memory_space<vmem>>, %arg3: memref<1x64xf32, #tpu.memory_space<vmem>>, %arg4: memref<64x64xf32, #tpu.memory_space<vmem>>) attributes {dimension_semantics = [#tpu.dimension_semantics<parallel>], iteration_bounds = array<i64: 2>, scalar_prefetch = 0 : i64, scratch_operands = 0 : i64, tpu.core_type = #tpu.core_type<tc>, window_params = [{transform_indices = @transform_0, window_bounds = array<i64: 64, 32>}, {pipeline_mode = #tpu.pipeline_mode<synchronous>, transform_indices = @transform_1, window_bounds = array<i64: 32, 64>}, {pipeline_mode = #tpu.pipeline_mode<synchronous>, transform_indices = @transform_2, window_bounds = array<i64: 1, 64>}, {transform_indices = @transform_3, window_bounds = array<i64: 64, 64>}]} {
    %c0 = arith.constant 0 : index
    %c0_0 = arith.constant 0 : index
    %0 = vector.load %arg1[%c0, %c0_0] : memref<64x32xf32, #tpu.memory_space<vmem>>, vector<64x32xf32>
    %c0_1 = arith.constant 0 : index
    %c0_2 = arith.constant 0 : index
    %1 = vector.load %arg2[%c0_1, %c0_2] : memref<32x64xf32, #tpu.memory_space<vmem>>, vector<32x64xf32>
    %cst = arith.constant dense<0.000000e+00> : vector<64x64xf32>
    %2 = tpu.matmul %0, %1, %cst {dimension_numbers = #tpu.dot_dimension_numbers<[1], [0], [0], [1], [0, 0, 1, 1], [], []>} : vector<64x32xf32>, vector<32x64xf32>, vector<64x64xf32> -> vector<64x64xf32>
    %c0_3 = arith.constant 0 : index
    %c0_4 = arith.constant 0 : index
    %3 = vector.load %arg3[%c0_3, %c0_4] : memref<1x64xf32, #tpu.memory_space<vmem>>, vector<1x64xf32>
    %4 = vector.broadcast %3 : vector<1x64xf32> to vector<64x64xf32>
    %5 = arith.addf %2, %4 : vector<64x64xf32>
    %c0_5 = arith.constant 0 : index
    %c0_6 = arith.constant 0 : index
    %6 = vector.load %arg4[%c0_5, %c0_6] : memref<64x64xf32, #tpu.memory_space<vmem>>, vector<64x64xf32>
    tpu.vector_store %arg4[%c0_5, %c0_6], %5 {strides = array<i32>} : memref<64x64xf32, #tpu.memory_space<vmem>>, vector<64x64xf32>,
    return
  }
  func.func @transform_0(%arg0: i32) -> (i32, i32) {
    %c0_i32 = arith.constant 0 : i32
    %c0_i32_0 = arith.constant 0 : i32
    return %arg0, %c0_i32 : i32, i32
  }
  func.func @transform_1(%arg0: i32) -> (i32, i32) {
    %c0_i32 = arith.constant 0 : i32
    %c0_i32_0 = arith.constant 0 : i32
    %c0_i32_1 = arith.constant 0 : i32
    return %c0_i32, %c0_i32_0 : i32, i32
  }
  func.func @transform_2(%arg0: i32) -> (i32, i32) {
    %c0_i32 = arith.constant 0 : i32
    %c0_i32_0 = arith.constant 0 : i32
    %c0_i32_1 = arith.constant 0 : i32
    return %c0_i32, %c0_i32_0 : i32, i32
  }
  func.func @transform_3(%arg0: i32) -> (i32, i32) {
    %c0_i32 = arith.constant 0 : i32
    %c0_i32_0 = arith.constant 0 : i32
    return %arg0, %c0_i32 : i32, i32
  }
}

</mosaic_0001>

<bundles_post_ra>
// kernel: tpu_custom_call.1
= control target key start
LH: loop header
LB: loop body
LE: loop exit
PB: predicated region body
PF: predicated region fallthrough
CT: control target
= control target key end

     0   :  { %s488_s12 = smov 0   ;;  %s536_s0 = inlined_call_operand.vmem [shape: f32[128,32], index: 0, kind: input, shape index: {}]   ;;  %s537_s1 = inlined_call_operand.vmem [shape: f32[32,64], index: 1, kind: input, shape index: {}]   ;;  %s538_s2 = inlined_call_operand.vmem [shape: f32[1,64], index: 2, kind: input, shape index: {}]   ;;  %s539_s3 = inlined_call_operand.vmem [shape: f32[128,64], index: 3, kind: output, shape index: {}]  }
   0x1 LB: > { %s388_s13 = sadd.s32 4294967295, %s466_s12   ;;  %p392_p0 = scmp.ge.s32.totalorder %s466_s12, 1  ;;  %s466_s12 = sphi %s488_s12, %s13_s12  }
   0x2   : > { %p138_p1 = scmp.lt.s32.totalorder %s466_s12, 3 }
   0x4   : > { %p139_p2 = pnand %p392_p0, %p138_p1 }
   0x5   : > { %v182_v0 = vld [vmem:[%s537_s1] sm:$0xff] (!%p139_p2)  ;;  %v183_v1 = vld [vmem:[%s537_s1 + $0x8] sm:$0xff] (!%p139_p2)  ;;  %v184_v2 = vld [vmem:[%s537_s1 + $0x10] sm:$0xff] (!%p139_p2)  ;;  %s393_s20 = sshll.u32 (!%p139_p2), %s388_s13, 3  ;;  %vm193_vm0 = vcmask (!%p139_p2), 261120   ;;  %vm323_vm1 = vcmask (!%p139_p2), 523264  }
   0x6   : > { %142 = sbr.rel (%p139_p2) target bundleno = 239 (0xef), region = 32  ;;  %v440_v3 = vpack.c.bf16 (!%p139_p2), %v183_v1, %v182_v0  ;;  %v185_v4 = vld [vmem:[%s537_s1 + $0x18] sm:$0xff] (!%p139_p2)  ;;  %p163_p3 = scmp.lt.s32.totalorder (!%p139_p2), %s393_s20, 15  ;;  %v397_v14 = vld [vmem:[%s538_s2] ss:$0 sm:$0xff] (!%p139_p2) }
   0x7   : > { %v444_v5 = vpack.c.bf16 (!%p139_p2), %v185_v4, %v184_v2 }
   0x8   : > { %441 = vmatprep.subr.bf16.mxu0 (!%p139_p2), %v440_v3  ;;  %448 = vmatprep.subr.bf16.mxu1 (!%p139_p2), %v440_v3 }
   0x9   : > { %443 = vmatpush3.bf16.msra.mxu0 (!%p139_p2), %v440_v3  ;;  %450 = vmatpush3.bf16.msra.mxu1 (!%p139_p2), %v440_v3 }
   0xa   : > { %445 = vmatprep.subr.bf16.mxu0 (!%p139_p2), %v444_v5  ;;  %449 = vmatprep.subr.bf16.mxu1 (!%p139_p2), %v444_v5 }
   0xd   : > { %s541_s20 = smov (!%p163_p3, %s393_s20), 15  ;;  %447 = vmatpush3.bf16.msra.mxu0 %v444_v5  ;;  %451 = vmatpush3.bf16.msra.mxu1 %v444_v5 }
   0xe   : > { %s394_s23 = sshll.u32 %s541_s20, 3 }
   0xf   : > { %s166_s26 = scalar_lea.vmem %s536_s0, %s394_s23  ;;  %s172_s4 = scalar_lea.vmem %s539_s3, %s394_s23 }
  0x10   : > { %v174_v6 = vld [vmem:[%s166_s26] sm:$0xff]  ;;  %v175_v8 = vld [vmem:[%s166_s26 + $0x8] sm:$0xff]  ;;  %v176_v10 = vld [vmem:[%s166_s26 + $0x10] sm:$0xff] }
  0x11   : > { %v178_v7 = vld [vmem:[%s166_s26 + $0x20] sm:$0xff]  ;;  %v179_v9 = vld [vmem:[%s166_s26 + $0x28] sm:$0xff]  ;;  %428 = vmatprep.mubr.msk.f32.mxu0 %vm193_vm0, %v174_v6  ;;  %v180_v11 = vld [vmem:[%s166_s26 + $0x30] sm:$0xff] }
  0x12   : > { %434 = vmatprep.mubr.msk.f32.mxu1 %vm193_vm0, %v178_v7  ;;  %429 = vmatmul.mubr.msk.f32.vlgmr.msra.gmra.mrb[0].mxu0 %vm193_vm0, %v175_v8  ;;  %v177_v12 = vld [vmem:[%s166_s26 + $0x18] sm:$0xff] }
  0x13   : > { %435 = vmatmul.mubr.msk.f32.vlgmr.msra.gmra.mrb[0].mxu1 %vm193_vm0, %v179_v9  ;;  %431 = vmatprep.mubr.msk.f32.mxu0 %vm193_vm0, %v176_v10  ;;  %v181_v13 = vld [vmem:[%s166_s26 + $0x38] sm:$0xff] }
  0x14   : > { %437 = vmatprep.mubr.msk.f32.mxu1 %vm193_vm0, %v180_v11 }
  0x16   : > { %432 = vmatmul.mubr.msk.f32.gmra.mrb[2].mxu0 %vm193_vm0, %v177_v12 }
  0x17   : > { %438 = vmatmul.mubr.msk.f32.gmra.mrb[2].mxu1 %vm193_vm0, %v181_v13 }
  0xe5   : > { %v430_v15 = vpop.f32.mrb[0].mxu0 }
  0xe6   : > { %v436_v16 = vpop.f32.mrb[0].mxu1  ;;  %v290_v17 = vadd.f32 %v430_v15, %v397_v14  ;;  %v284_v19 = vpop.f32.mrb[1].mxu0 }
  0xe7   : > { %v310_v18 = vadd.f32 %v436_v16, %v397_v14  ;;  %v304_v20 = vpop.f32.mrb[1].mxu1  ;;  %v285_v21 = vadd.f32 %v397_v14, %v284_v19 }
  0xe8   : > { %v305_v22 = vadd.f32 %v397_v14, %v304_v20  ;;  %325 = vst.msk [vmem:[%s172_s4 + $0x8] sm:$0xff] %vm323_vm1, %v290_v17 }
  0xe9   : > { %329 = vst.msk [vmem:[%s172_s4 + $0x28] sm:$0xff] %vm323_vm1, %v310_v18  ;;  %324 = vst.msk [vmem:[%s172_s4] sm:$0xff] %vm323_vm1, %v285_v21  ;;  %v433_v23 = vpop.f32.mrb[2].mxu0 }
  0xea   : > { %328 = vst.msk [vmem:[%s172_s4 + $0x20] sm:$0xff] %vm323_vm1, %v305_v22  ;;  %v439_v24 = vpop.f32.mrb[2].mxu1  ;;  %v300_v25 = vadd.f32 %v433_v23, %v397_v14  ;;  %v294_v27 = vpop.f32.mrb[3].mxu0 }
  0xeb   : > { %v320_v26 = vadd.f32 %v439_v24, %v397_v14  ;;  %v314_v28 = vpop.f32.mrb[3].mxu1  ;;  %v295_v29 = vadd.f32 %v397_v14, %v294_v27 }
  0xec   : > { %v315_v30 = vadd.f32 %v397_v14, %v314_v28  ;;  %327 = vst.msk [vmem:[%s172_s4 + $0x18] sm:$0xff] %vm323_vm1, %v300_v25 }
  0xed   : > { %331 = vst.msk [vmem:[%s172_s4 + $0x38] sm:$0xff] %vm323_vm1, %v320_v26  ;;  %326 = vst.msk [vmem:[%s172_s4 + $0x10] sm:$0xff] %vm323_vm1, %v295_v29 }
  0xee   : > { %330 = vst.msk [vmem:[%s172_s4 + $0x30] sm:$0xff] %vm323_vm1, %v315_v30 }
  0xef PF: > { %s13_s12 = sadd.s32 1, %s466_s12  }
  0xf0   : > { %p10_p4 = scmp.ge.s32.totalorder %s13_s12, 4  }
  0xf2   :  { %12 = sbr.rel (!%p10_p4) target bundleno = 1 (0x1), region = 62 }

</bundles_post_ra>
